<compile_context>
chip_gen: v7x
topology: tpu7x:2x2x1
jax: 0.10.0
libtpu: 0.0.40
codegen_flags: <defaults>
</compile_context>

<pallas_src>
import jax
import jax.numpy as jnp
from jax.experimental import pallas as pl
from jax.experimental.pallas import tpu as pltpu

_LANE = 128
_SUBLANE = 8


def _round_up(n, m):
    return ((n + m - 1) // m) * m


def qnetwork_kernel(x_ref, w1_ref, b1_ref, w2_ref, b2_ref, w3_ref, b3_ref, o_ref):
    # fc1 + bias + relu, fused; f32 input cast to bf16 at the MXU, f32 accumulation.
    h = jnp.maximum(
        jnp.dot(x_ref[...].astype(jnp.bfloat16), w1_ref[...],
                preferred_element_type=jnp.float32) + b1_ref[0:1, :],
        0.0,
    ).astype(jnp.bfloat16)
    # fc2 + bias + relu, fused.
    h = jnp.maximum(
        jnp.dot(h, w2_ref[...], preferred_element_type=jnp.float32) + b2_ref[0:1, :],
        0.0,
    ).astype(jnp.bfloat16)
    # output layer (no activation); narrow (tb, out_size) store -> tiny HBM write-back.
    o_ref[...] = (
        jnp.dot(h, w3_ref[...], preferred_element_type=jnp.float32) + b3_ref[0:1, :]
    ).astype(o_ref.dtype)


def _choose_tile(B, batch_tile):
    """Batch tile: >= 4 grid steps for large B (>= 2 per TC on v7x), cap at batch_tile."""
    pB8 = _round_up(B, _SUBLANE)
    tb = _round_up(-(-pB8 // 4), _SUBLANE)          # cdiv(pB8, 4) rounded to sublane
    return max(_SUBLANE, min(tb, batch_tile))


def qnetwork_forward(x, params, *, batch_tile=1024):
    """x: [B, input_size] float32. params: dict of (w, b) per layer, w as [in, out], b as [1, out]."""
    w1, b1 = params["fc1"]
    w2, b2 = params["fc2"]
    w3, b3 = params["output"]

    B, in_size = x.shape
    hidden = w1.shape[1]
    out_size = w3.shape[1]
    hid_p = _round_up(hidden, _LANE)

    tb = _choose_tile(B, batch_tile)
    pB = _round_up(B, tb)

    # Only pad the batch rows of x if the grid doesn't divide B (tiny 16-col copy).
    xr = x if pB == B else jnp.pad(x, ((0, pB - B), (0, 0)))

    def padw(w, rows, cols):
        w = jnp.pad(w, ((0, rows - w.shape[0]), (0, cols - w.shape[1])))
        return w.astype(jnp.bfloat16)

    def padb(b, cols):
        b = jnp.pad(b, ((0, 0), (0, cols - b.shape[1]))).astype(jnp.float32)
        return jnp.broadcast_to(b, (_SUBLANE, cols))

    # Resident weights/biases: padding here is free (DMA'd once, stay in VMEM).
    w1b = padw(w1, in_size, hid_p)          # (16, 128)  bf16
    w2b = padw(w2, hid_p, hid_p)            # (128, 128) bf16
    w3b = padw(w3, hid_p, out_size)         # (128, 4)   bf16 -> narrow output tile
    b1b = padb(b1, hid_p)                   # (8, 128)   f32
    b2b = padb(b2, hid_p)                   # (8, 128)   f32
    b3b = padb(b3, out_size)                # (8, 4)     f32

    grid = (pB // tb,)
    resident = lambda shape: pl.BlockSpec(shape, lambda i: (0, 0))  # stays in VMEM across steps

    cost = pl.CostEstimate(
        flops=2 * pB * (in_size * hidden + hidden * hidden + hidden * out_size),
        transcendentals=0,
        bytes_accessed=pB * in_size * 4 + pB * out_size * 4
        + 2 * (in_size * hid_p + hid_p * hid_p + hid_p * out_size)
        + 4 * _SUBLANE * (2 * hid_p + out_size),
    )

    out = pl.pallas_call(
        qnetwork_kernel,
        out_shape=jax.ShapeDtypeStruct((pB, out_size), jnp.float32),
        grid=grid,
        in_specs=[
            pl.BlockSpec((tb, in_size), lambda i: (i, 0)),   # x: f32, un-padded lanes, batch-tiled
            resident((in_size, hid_p)),                      # w1
            resident((_SUBLANE, hid_p)),                     # b1
            resident((hid_p, hid_p)),                        # w2
            resident((_SUBLANE, hid_p)),                     # b2
            resident((hid_p, out_size)),                     # w3 (narrow N)
            resident((_SUBLANE, out_size)),                  # b3
        ],
        out_specs=pl.BlockSpec((tb, out_size), lambda i: (i, 0)),
        compiler_params=pltpu.CompilerParams(
            dimension_semantics=("parallel",),
        ),
        cost_estimate=cost,
    )(xr, w1b, b1b, w2b, b2b, w3b, b3b)

    return out if pB == B else out[:B]


def init_params(key, input_size, hidden_size, output_size):
    """Deterministic init mirroring nn.Linear's default U(-1/sqrt(fan_in), 1/sqrt(fan_in))."""
    def linear(k, fan_in, fan_out):
        kw, kb = jax.random.split(k)
        bound = 1.0 / jnp.sqrt(jnp.float32(fan_in))
        w = jax.random.uniform(kw, (fan_in, fan_out), jnp.float32, -bound, bound)
        b = jax.random.uniform(kb, (1, fan_out), jnp.float32, -bound, bound)
        return w, b

    k1, k2, k3 = jax.random.split(key, 3)
    return {
        "fc1": linear(k1, input_size, hidden_size),
        "fc2": linear(k2, hidden_size, hidden_size),
        "output": linear(k3, hidden_size, output_size),
    }


def _ref_f32(x, params):
    w1, b1 = params["fc1"]; w2, b2 = params["fc2"]; w3, b3 = params["output"]
    h = jnp.maximum(x @ w1 + b1, 0.0)
    h = jnp.maximum(h @ w2 + b2, 0.0)
    return h @ w3 + b3


def _ref_bf16(x, params):
    """Reference mirroring the kernel's bf16-operand / f32-accumulation math."""
    w1, b1 = params["fc1"]; w2, b2 = params["fc2"]; w3, b3 = params["output"]
    bf = jnp.bfloat16
    h = jnp.dot(x.astype(bf), w1.astype(bf), preferred_element_type=jnp.float32) + b1
    h = jnp.maximum(h, 0.0)
    h = jnp.dot(h.astype(bf), w2.astype(bf), preferred_element_type=jnp.float32) + b2
    h = jnp.maximum(h, 0.0)
    return jnp.dot(h.astype(bf), w3.astype(bf), preferred_element_type=jnp.float32) + b3


if __name__ == "__main__":
    key = jax.random.PRNGKey(0)
    batch, input_size, hidden_size, output_size = 8, 16, 32, 4

    kx, kp = jax.random.split(key)
    x = jax.random.normal(kx, (batch, input_size), jnp.float32)
    params = init_params(kp, input_size, hidden_size, output_size)

    out = jax.block_until_ready(qnetwork_forward(x, params))
    assert out.shape == (batch, output_size)
    assert jnp.allclose(out, _ref_bf16(x, params), atol=1e-4, rtol=1e-4)   # exact bf16-operand math
    assert jnp.allclose(out, _ref_f32(x, params), atol=5e-2, rtol=5e-2)    # semantics vs pure f32

    # Larger, non-tile-multiple batch exercises the multi-step grid + row-padding path.
    xb = jax.random.normal(jax.random.PRNGKey(1), (1000, input_size), jnp.float32)
    outb = jax.block_until_ready(qnetwork_forward(xb, params))
    assert outb.shape == (1000, output_size)
    assert jnp.allclose(outb, _ref_bf16(xb, params), atol=1e-4, rtol=1e-4)

    print("KERNEL_OK")
</pallas_src>

<mosaic_0001>
module attributes {stable_mosaic.version = 11 : i64} {
  func.func @qnetwork_kernel(%arg0: i32, %arg1: memref<8x16xf32, #tpu.memory_space<vmem>>, %arg2: memref<16x128xbf16, #tpu.memory_space<vmem>>, %arg3: memref<8x128xf32, #tpu.memory_space<vmem>>, %arg4: memref<128x128xbf16, #tpu.memory_space<vmem>>, %arg5: memref<8x128xf32, #tpu.memory_space<vmem>>, %arg6: memref<128x4xbf16, #tpu.memory_space<vmem>>, %arg7: memref<8x4xf32, #tpu.memory_space<vmem>>, %arg8: memref<8x4xf32, #tpu.memory_space<vmem>>) attributes {dimension_semantics = [#tpu.dimension_semantics<parallel>], iteration_bounds = array<i64: 1>, scalar_prefetch = 0 : i64, scratch_operands = 0 : i64, tpu.core_type = #tpu.core_type<tc>, window_params = [{transform_indices = @transform_0, window_bounds = array<i64: 8, 16>}, {pipeline_mode = #tpu.pipeline_mode<synchronous>, transform_indices = @transform_1, window_bounds = array<i64: 16, 128>}, {pipeline_mode = #tpu.pipeline_mode<synchronous>, transform_indices = @transform_2, window_bounds = array<i64: 8, 128>}, {pipeline_mode = #tpu.pipeline_mode<synchronous>, transform_indices = @transform_3, window_bounds = array<i64: 128, 128>}, {pipeline_mode = #tpu.pipeline_mode<synchronous>, transform_indices = @transform_4, window_bounds = array<i64: 8, 128>}, {pipeline_mode = #tpu.pipeline_mode<synchronous>, transform_indices = @transform_5, window_bounds = array<i64: 128, 4>}, {pipeline_mode = #tpu.pipeline_mode<synchronous>, transform_indices = @transform_6, window_bounds = array<i64: 8, 4>}, {transform_indices = @transform_7, window_bounds = array<i64: 8, 4>}]} {
    %c0 = arith.constant 0 : index
    %c0_0 = arith.constant 0 : index
    %0 = vector.load %arg1[%c0, %c0_0] : memref<8x16xf32, #tpu.memory_space<vmem>>, vector<8x16xf32>
    %1 = arith.truncf %0 : vector<8x16xf32> to vector<8x16xbf16>
    %c0_1 = arith.constant 0 : index
    %c0_2 = arith.constant 0 : index
    %2 = vector.load %arg2[%c0_1, %c0_2] : memref<16x128xbf16, #tpu.memory_space<vmem>>, vector<16x128xbf16>
    %cst = arith.constant dense<0.000000e+00> : vector<8x128xf32>
    %3 = tpu.matmul %1, %2, %cst {dimension_numbers = #tpu.dot_dimension_numbers<[1], [0], [0], [1], [0, 0, 1, 1], [], []>} : vector<8x16xbf16>, vector<16x128xbf16>, vector<8x128xf32> -> vector<8x128xf32>
    %c0_3 = arith.constant 0 : index
    %c0_4 = arith.constant 0 : index
    %4 = vector.load %arg3[%c0_3, %c0_4] : memref<8x128xf32, #tpu.memory_space<vmem>>, vector<1x128xf32>
    %5 = vector.broadcast %4 : vector<1x128xf32> to vector<8x128xf32>
    %6 = arith.addf %3, %5 : vector<8x128xf32>
    %cst_5 = arith.constant 0.000000e+00 : f32
    %7 = vector.broadcast %cst_5 : f32 to vector<8x128xf32>
    %8 = arith.maximumf %6, %7 : vector<8x128xf32>
    %9 = arith.truncf %8 : vector<8x128xf32> to vector<8x128xbf16>
    %c0_6 = arith.constant 0 : index
    %c0_7 = arith.constant 0 : index
    %10 = vector.load %arg4[%c0_6, %c0_7] : memref<128x128xbf16, #tpu.memory_space<vmem>>, vector<128x128xbf16>
    %cst_8 = arith.constant dense<0.000000e+00> : vector<8x128xf32>
    %11 = tpu.matmul %9, %10, %cst_8 {dimension_numbers = #tpu.dot_dimension_numbers<[1], [0], [0], [1], [0, 0, 1, 1], [], []>} : vector<8x128xbf16>, vector<128x128xbf16>, vector<8x128xf32> -> vector<8x128xf32>
    %c0_9 = arith.constant 0 : index
    %c0_10 = arith.constant 0 : index
    %12 = vector.load %arg5[%c0_9, %c0_10] : memref<8x128xf32, #tpu.memory_space<vmem>>, vector<1x128xf32>
    %13 = vector.broadcast %12 : vector<1x128xf32> to vector<8x128xf32>
    %14 = arith.addf %11, %13 : vector<8x128xf32>
    %cst_11 = arith.constant 0.000000e+00 : f32
    %15 = vector.broadcast %cst_11 : f32 to vector<8x128xf32>
    %16 = arith.maximumf %14, %15 : vector<8x128xf32>
    %17 = arith.truncf %16 : vector<8x128xf32> to vector<8x128xbf16>
    %c0_12 = arith.constant 0 : index
    %c0_13 = arith.constant 0 : index
    %18 = vector.load %arg6[%c0_12, %c0_13] : memref<128x4xbf16, #tpu.memory_space<vmem>>, vector<128x4xbf16>
    %cst_14 = arith.constant dense<0.000000e+00> : vector<8x4xf32>
    %19 = tpu.matmul %17, %18, %cst_14 {dimension_numbers = #tpu.dot_dimension_numbers<[1], [0], [0], [1], [0, 0, 1, 1], [], []>} : vector<8x128xbf16>, vector<128x4xbf16>, vector<8x4xf32> -> vector<8x4xf32>
    %c0_15 = arith.constant 0 : index
    %c0_16 = arith.constant 0 : index
    %20 = vector.load %arg7[%c0_15, %c0_16] : memref<8x4xf32, #tpu.memory_space<vmem>>, vector<1x4xf32>
    %21 = vector.broadcast %20 : vector<1x4xf32> to vector<8x4xf32>
    %22 = arith.addf %19, %21 : vector<8x4xf32>
    %c0_17 = arith.constant 0 : index
    %c0_18 = arith.constant 0 : index
    %23 = vector.load %arg8[%c0_17, %c0_18] : memref<8x4xf32, #tpu.memory_space<vmem>>, vector<8x4xf32>
    tpu.vector_store %arg8[%c0_17, %c0_18], %22 {strides = array<i32>} : memref<8x4xf32, #tpu.memory_space<vmem>>, vector<8x4xf32>,
    return
  }
  func.func @transform_0(%arg0: i32) -> (i32, i32) {
    %c0_i32 = arith.constant 0 : i32
    %c0_i32_0 = arith.constant 0 : i32
    return %arg0, %c0_i32 : i32, i32
  }
  func.func @transform_1(%arg0: i32) -> (i32, i32) {
    %c0_i32 = arith.constant 0 : i32
    %c0_i32_0 = arith.constant 0 : i32
    %c0_i32_1 = arith.constant 0 : i32
    return %c0_i32, %c0_i32_0 : i32, i32
  }
  func.func @transform_2(%arg0: i32) -> (i32, i32) {
    %c0_i32 = arith.constant 0 : i32
    %c0_i32_0 = arith.constant 0 : i32
    %c0_i32_1 = arith.constant 0 : i32
    return %c0_i32, %c0_i32_0 : i32, i32
  }
  func.func @transform_3(%arg0: i32) -> (i32, i32) {
    %c0_i32 = arith.constant 0 : i32
    %c0_i32_0 = arith.constant 0 : i32
    %c0_i32_1 = arith.constant 0 : i32
    return %c0_i32, %c0_i32_0 : i32, i32
  }
  func.func @transform_4(%arg0: i32) -> (i32, i32) {
    %c0_i32 = arith.constant 0 : i32
    %c0_i32_0 = arith.constant 0 : i32
    %c0_i32_1 = arith.constant 0 : i32
    return %c0_i32, %c0_i32_0 : i32, i32
  }
  func.func @transform_5(%arg0: i32) -> (i32, i32) {
    %c0_i32 = arith.constant 0 : i32
    %c0_i32_0 = arith.constant 0 : i32
    %c0_i32_1 = arith.constant 0 : i32
    return %c0_i32, %c0_i32_0 : i32, i32
  }
  func.func @transform_6(%arg0: i32) -> (i32, i32) {
    %c0_i32 = arith.constant 0 : i32
    %c0_i32_0 = arith.constant 0 : i32
    %c0_i32_1 = arith.constant 0 : i32
    return %c0_i32, %c0_i32_0 : i32, i32
  }
  func.func @transform_7(%arg0: i32) -> (i32, i32) {
    %c0_i32 = arith.constant 0 : i32
    %c0_i32_0 = arith.constant 0 : i32
    return %arg0, %c0_i32 : i32, i32
  }
}

</mosaic_0001>

<bundles_post_ra>
// kernel: tpu_custom_call.1
= control target key start
LH: loop header
LB: loop body
LE: loop exit
PB: predicated region body
PF: predicated region fallthrough
CT: control target
= control target key end

     0   :  { %12 = vsyncpa [#allocation3], 0  ;;  %s458_s24 = smov [#allocation2]   ;;  %s596_s0 = inlined_call_operand.vmem [shape: f32[8,16], index: 0, kind: input, shape index: {}]   ;;  %s597_s1 = inlined_call_operand.vmem [shape: bf16[16,128], index: 1, kind: input, shape index: {}]   ;;  %s598_s2 = inlined_call_operand.vmem [shape: f32[8,128], index: 2, kind: input, shape index: {}]   ;;  %s599_s3 = inlined_call_operand.vmem [shape: bf16[128,128], index: 3, kind: input, shape index: {}]   ;;  %s600_s4 = inlined_call_operand.hbm [shape: f32[8,128], index: 4, kind: input, shape index: {}]   ;;  %s601_s5 = inlined_call_operand.vmem [shape: bf16[128,4], index: 5, kind: input, shape index: {}]   ;;  %s602_s6 = inlined_call_operand.vmem [shape: f32[8,4], index: 6, kind: input, shape index: {}]   ;;  %s603_s7 = inlined_call_operand.vmem [shape: f32[8,4], index: 7, kind: output, shape index: {}]  }
   0x1   :  { %s27_s25 = sshll.u32 %s458_s24, 4  ;;  %s434_s28 = scalar_lea.hbm %s600_s4, 128  ;;  %s28_s25 = int_to_ptr.vmem [resolvable:$true] %s27_s25 }
   0x2   :  { %p435_p0 = scmp.ne.s32.totalorder %s600_s4, %s434_s28  ;;  %p438_p1 = scmp.lt.u32.totalorder %s434_s28, %s600_s4 }
   0x4   :  { %p440_p2 = pnand %p438_p1, %p435_p0 }
   0x6   :  { %443 = shalt.err (!%p440_p2)
}
   0x7   :  { %s444_s10 = scalar_lea.vmem %s28_s25, 128  ;;  %p449_p4 = scmp.lt.s32.totalorder %s28_s25, %s28_s25 }
   0x8   :  { %p445_p3 = scmp.ne.s32.totalorder %s28_s25, %s444_s10  ;;  %p450_p5 = scmp.lt.s32.totalorder %s444_s10, %s444_s10 }
   0xa   :  { %p451_p6 = por %p450_p5, %p449_p4 }
   0xc   :  { %p452_p7 = pnand %p451_p6, %p445_p3 }
   0xe   :  { %455 = shalt.err (!%p452_p7)
}
   0xf   :  { %30 = dma.hbm_to_vmem [thread:$0]  %s600_s4, 128, %s28_s25, [#allocation3]  }
  0x10   :  { %456 = dma.done.wait [#allocation3], 128  }
  0x11   :  { %457 = vsyncadd [#allocation3], 4294967168  ;;  %v459_v0 = vmov 0.0   ;;  %vm460_vm0 = vmmov 0   ;;  %v417_v1 = vld [vmem:[%s597_s1] sm:$0xff]   ;;  %vm54_vm1 = vcmask 130048  }
  0x12   :  { %368 = vmatprep.subr.bf16.mxu0 %v459_v0  ;;  %370 = vmatprep.mubr.msk.bf16.mxu0 %vm460_vm0, %v459_v0  ;;  %v39_v2 = vld [vmem:[%s596_s0] sm:$0xff]  ;;  %v419_v5 = vld [vmem:[%s599_s3 + $0x8] sm:$0xff]   ;;  %v420_v6 = vld [vmem:[%s599_s3 + $0x10] sm:$0xff]   ;;  %vm320_vm2 = vcmask 31744  }
  0x13   :  { %374 = vmatprep.subr.bf16.mxu1 %v459_v0  ;;  %390 = vmatprep.mubr.msk.bf16.mxu1 %vm460_vm0, %v459_v0  ;;  %v40_v3 = vpack.c.bf16 %v39_v2, %v39_v2  ;;  %v418_v4 = vld [vmem:[%s599_s3] sm:$0xff]   ;;  %v421_v7 = vld [vmem:[%s599_s3 + $0x18] sm:$0xff]   ;;  %v423_v9 = vld [vmem:[%s599_s3 + $0x28] sm:$0xff]  }
  0x14   :  { %369 = vmatpush3.bf16.msra.mxu0 %v417_v1  ;;  %375 = vmatpush3.bf16.msra.mxu1 %v418_v4  ;;  %v422_v8 = vld [vmem:[%s599_s3 + $0x20] sm:$0xff]   ;;  %v424_v10 = vld [vmem:[%s599_s3 + $0x30] sm:$0xff]   ;;  %v425_v11 = vld [vmem:[%s599_s3 + $0x38] sm:$0xff]  }
  0x15   :  { %394 = vmatprep.subr.bf16.mxu0 %v459_v0  ;;  %376 = vmatprep.subr.bf16.mxu1 %v459_v0  ;;  %v426_v12 = vld [vmem:[%s601_s5] sm:$0xff]   ;;  %v427_v13 = vld [vmem:[%s601_s5 + $0x8] sm:$0xff]   ;;  %v428_v14 = vld [vmem:[%s601_s5 + $0x10] sm:$0xff]  }
  0x16   :  { %v429_v15 = vld [vmem:[%s601_s5 + $0x18] sm:$0xff]   ;;  %v430_v16 = vld [vmem:[%s601_s5 + $0x20] sm:$0xff]   ;;  %v431_v17 = vld [vmem:[%s601_s5 + $0x28] sm:$0xff]  }
  0x17   :  { %371 = vmatmul.mubr.msk.bf16.vlgmr.msra.gmra.mrb[0].mxu0 %vm54_vm1, %v40_v3  ;;  %v327_v18 = vld [vmem:[%s598_s2] ss:$0 sm:$0xff]  ;;  %v432_v26 = vld [vmem:[%s601_s5 + $0x30] sm:$0xff]   ;;  %v433_v27 = vld [vmem:[%s601_s5 + $0x38] sm:$0xff]  }
  0x18   :  { %410 = vmatprep.mubr.msk.bf16.mxu0 %vm460_vm0, %v459_v0  ;;  %377 = vmatpush3.bf16.msra.mxu1 %v419_v5  ;;  %v330_v28 = vld [vmem:[#allocation2] ss:$0 sm:$0xff] }
  0x19   :  { %378 = vmatprep.subr.bf16.mxu1 %v459_v0  ;;  %395 = vmatpush3.bf16.msra.mxu0 %v426_v12  ;;  %v339_v36 = vld [vmem:[%s602_s6] ss:$0 sm:$0xff] }
  0x1a   :  { %396 = vmatprep.subr.bf16.mxu0 %v459_v0 }
  0x1c   :  { %379 = vmatpush3.bf16.msra.mxu1 %v420_v6 }
  0x1d   :  { %380 = vmatprep.subr.bf16.mxu1 %v459_v0  ;;  %397 = vmatpush3.bf16.msra.mxu0 %v427_v13 }
  0x1e   :  { %398 = vmatprep.subr.bf16.mxu0 %v459_v0 }
  0x20   :  { %381 = vmatpush3.bf16.msra.mxu1 %v421_v7 }
  0x21   :  { %382 = vmatprep.subr.bf16.mxu1 %v459_v0  ;;  %399 = vmatpush3.bf16.msra.mxu0 %v428_v14 }
  0x22   :  { %400 = vmatprep.subr.bf16.mxu0 %v459_v0 }
  0x24   :  { %383 = vmatpush3.bf16.msra.mxu1 %v422_v8 }
  0x25   :  { %384 = vmatprep.subr.bf16.mxu1 %v459_v0  ;;  %401 = vmatpush3.bf16.msra.mxu0 %v429_v15 }
  0x26   :  { %402 = vmatprep.subr.bf16.mxu0 %v459_v0 }
  0x28   :  { %385 = vmatpush3.bf16.msra.mxu1 %v423_v9 }
  0x29   :  { %386 = vmatprep.subr.bf16.mxu1 %v459_v0  ;;  %403 = vmatpush3.bf16.msra.mxu0 %v430_v16 }
  0x2a   :  { %404 = vmatprep.subr.bf16.mxu0 %v459_v0 }
  0x2c   :  { %387 = vmatpush3.bf16.msra.mxu1 %v424_v10 }
  0x2d   :  { %388 = vmatprep.subr.bf16.mxu1 %v459_v0  ;;  %405 = vmatpush3.bf16.msra.mxu0 %v431_v17 }
  0x2e   :  { %406 = vmatprep.subr.bf16.mxu0 %v459_v0 }
  0x30   :  { %389 = vmatpush3.bf16.msra.mxu1 %v425_v11 }
  0x31   :  { %407 = vmatpush3.bf16.msra.mxu0 %v432_v26 }
  0x32   :  { %408 = vmatprep.subr.bf16.mxu0 %v459_v0 }
  0x35   :  { %409 = vmatpush3.bf16.msra.mxu0 %v433_v27 }
  0xea   :  { %v92_v19 = vpop.f32.mrb[0].mxu0 }
  0xeb   :  { %v93_v20 = vadd.f32 %v327_v18, %v92_v19  ;;  %v372_v21 = vpop.f32.mrb[1].mxu0 }
  0xec   :  { %v95_v22 = vpop.f32.mrb[2].mxu0 }
  0xed   :  { %v98_v23 = vmax.f32 %v93_v20, 0.0  ;;  %v373_v24 = vpop.f32.mrb[3].mxu0 }
  0xef   :  { %v99_v25 = vpack.c.bf16 %v98_v23, %v98_v23 }
  0xf1   :  { %391 = vmatmul.mubr.bf16.vlgmr.msra.gmra.mrb[0].mxu1 %v99_v25 }
 0x1c4   :  { %v203_v29 = vpop.f32.mrb[0].mxu1 }
 0x1c5   :  { %v204_v30 = vadd.f32 %v330_v28, %v203_v29  ;;  %v392_v31 = vpop.f32.mrb[1].mxu1 }
 0x1c6   :  { %v206_v32 = vpop.f32.mrb[2].mxu1 }
 0x1c7   :  { %v209_v33 = vmax.f32 %v204_v30, 0.0  ;;  %v393_v34 = vpop.f32.mrb[3].mxu1 }
 0x1c9   :  { %v210_v35 = vpack.c.bf16 %v209_v33, %v209_v33 }
 0x1cb   :  { %411 = vmatmul.mubr.bf16.vlgmr.msra.gmra.mrb[4].mxu0 %v210_v35 }
 0x29e   :  { %v314_v37 = vpop.f32.mrb[4].mxu0 }
 0x29f   :  { %v315_v38 = vadd.f32 %v339_v36, %v314_v37  ;;  %v412_v39 = vpop.f32.mrb[5].mxu0 }
 0x2a0   :  { %v317_v40 = vpop.f32.mrb[6].mxu0 }
 0x2a1   :  { %321 = vst.msk [vmem:[%s603_s7] sm:$0xff] %vm320_vm2, %v315_v38  ;;  %v413_v41 = vpop.f32.mrb[7].mxu0 }
 0x2a2   :  { %326 = vsyncpa [#allocation3], 1 }

</bundles_post_ra>
